<compile_context>
chip_gen: v6e
topology: v6e:2x2x1
jax: 0.10.0
libtpu: 0.0.40
codegen_flags: <defaults>
</compile_context>

<pallas_src>
import jax
import jax.numpy as jnp
from jax import lax
from jax.experimental import pallas as pl
from jax.experimental.pallas import tpu as pltpu


def _basic_block_v2_kernel(x_ref, s1_ref, t1_ref, w1_ref, s2_ref, t2_ref, w2_ref,
                           o_ref, pre_pad, mid_pad):
    # x_ref:            (1, H, W*C)   f32, lane-folded NHWC tile for one image
    # s*/t*_ref:        (1, W*C)      f32, BN scale/bias tiled across W
    # w*_ref:           (3, W*C, W*C) bf16, block-banded conv weights (one per dy tap)
    # o_ref:            (1, H, W*C)   f32
    # pre_pad/mid_pad:  (H+2, W*C)    f32 scratch with 1-row top/bottom halo
    H = x_ref.shape[1]
    WC = x_ref.shape[2]

    # Zero only the 1-row halos (interior is fully rewritten every step; halos never
    # are). Done every step so the "parallel" batch axis is megacore-safe on v7x.
    zrow = jnp.zeros((1, WC), jnp.float32)
    pre_pad[pl.ds(0, 1), :] = zrow
    pre_pad[pl.ds(H + 1, 1), :] = zrow
    mid_pad[pl.ds(0, 1), :] = zrow
    mid_pad[pl.ds(H + 1, 1), :] = zrow

    x = x_ref[0]                                               # (H, WC) f32

    # ---- BN1 (folded, eval mode) + ReLU (f32 on the VPU) ----
    pre = jnp.maximum(x * s1_ref[0] + t1_ref[0], 0.0)
    pre_pad[pl.ds(1, H), :] = pre

    def band_conv(src_pad, w_ref):
        # 3x3 conv == sum over the 3 dy taps of a lane-dense banded matmul; the dx taps
        # and width padding live inside w_ref. bf16 MXU inputs, f32 accumulation.
        acc = jnp.dot(src_pad[pl.ds(0, H), :].astype(jnp.bfloat16), w_ref[0],
                      preferred_element_type=jnp.float32)
        acc = acc + jnp.dot(src_pad[pl.ds(1, H), :].astype(jnp.bfloat16), w_ref[1],
                            preferred_element_type=jnp.float32)
        acc = acc + jnp.dot(src_pad[pl.ds(2, H), :].astype(jnp.bfloat16), w_ref[2],
                            preferred_element_type=jnp.float32)
        return acc

    # ---- conv1 ----
    acc1 = band_conv(pre_pad, w1_ref)                          # (H, WC) f32

    # ---- BN2 + ReLU ----
    mid = jnp.maximum(acc1 * s2_ref[0] + t2_ref[0], 0.0)
    mid_pad[pl.ds(1, H), :] = mid

    # ---- conv2 ----
    acc2 = band_conv(mid_pad, w2_ref)

    # ---- residual add (identity = x, pre-BN, as in BasicBlockV2); 128-lane store ----
    o_ref[0] = acc2 + x


def _basic_block_v2_pallas(x_slab, s1, t1, w1_band, s2, t2, w2_band):
    B, H, WC = x_slab.shape
    grid_spec = pltpu.PrefetchScalarGridSpec(
        num_scalar_prefetch=0,
        grid=(B,),
        in_specs=[
            pl.BlockSpec((1, H, WC), lambda b: (b, 0, 0)),
            pl.BlockSpec((1, WC), lambda b: (0, 0)),
            pl.BlockSpec((1, WC), lambda b: (0, 0)),
            pl.BlockSpec((3, WC, WC), lambda b: (0, 0, 0)),
            pl.BlockSpec((1, WC), lambda b: (0, 0)),
            pl.BlockSpec((1, WC), lambda b: (0, 0)),
            pl.BlockSpec((3, WC, WC), lambda b: (0, 0, 0)),
        ],
        out_specs=pl.BlockSpec((1, H, WC), lambda b: (b, 0, 0)),
        scratch_shapes=[
            pltpu.VMEM((H + 2, WC), jnp.float32),
            pltpu.VMEM((H + 2, WC), jnp.float32),
        ],
    )
    return pl.pallas_call(
        _basic_block_v2_kernel,
        out_shape=jax.ShapeDtypeStruct((B, H, WC), jnp.float32),
        grid_spec=grid_spec,
        compiler_params=pltpu.CompilerParams(
            dimension_semantics=("parallel",),      # batch images are independent
            vmem_limit_bytes=32 * 1024 * 1024,
        ),
    )(x_slab, s1, t1, w1_band, s2, t2, w2_band)


def _banded_conv_weights(w_oihw, width, dtype):
    """Fold the dx taps + width zero-padding of a 3x3 conv into block-banded matrices.

    Returns (kh, width*Cin, width*Cout). For kernel row dy:
        out_row[h, :] += act_padded_row[h + dy - 1, :] @ B[dy]
    implements all three dx taps (stride 1, padding 1) for that dy.
    """
    cout, cin, kh, kw = w_oihw.shape
    w_hwio = jnp.transpose(w_oihw, (2, 3, 1, 0))               # (kh, kw, cin, cout)
    w_in = jnp.arange(width)[:, None]                          # input pixel (block row)
    w_out = jnp.arange(width)[None, :]                         # output pixel (block col)
    tap = w_in - w_out + (kw // 2)                             # which dx tap links them
    valid = (tap >= 0) & (tap < kw)
    tap_c = jnp.clip(tap, 0, kw - 1)
    mats = []
    for dy in range(kh):
        band = w_hwio[dy][tap_c]                               # (width, width, cin, cout)
        band = band * valid[:, :, None, None].astype(band.dtype)
        band = jnp.transpose(band, (0, 2, 1, 3))               # (width, cin, width, cout)
        mats.append(band.reshape(width * cin, width * cout))
    return jnp.stack(mats, axis=0).astype(dtype)


@jax.jit
def basic_block_v2(x_nchw, params):
    """Wrapper taking NCHW input (PyTorch convention) and PyTorch-shaped params."""
    eps = 1e-5
    B, C, H, W = x_nchw.shape
    cout = params["w1"].shape[0]
    assert cout == C, "identity residual requires inplanes == planes (no downsample)"

    g1, b1, m1, v1 = params["bn1"]
    g2, b2, m2, v2 = params["bn2"]
    s1 = g1 / jnp.sqrt(v1 + eps)
    t1 = b1 - m1 * s1
    s2 = g2 / jnp.sqrt(v2 + eps)
    t2 = b2 - m2 * s2

    # Lane-folded activations: NCHW -> NHWC -> (B, H, W*C); BN params tiled across W.
    x_slab = jnp.transpose(x_nchw, (0, 2, 3, 1)).reshape(B, H, W * C)
    s1_l = jnp.tile(s1, W)[None, :]
    t1_l = jnp.tile(t1, W)[None, :]
    s2_l = jnp.tile(s2, W)[None, :]
    t2_l = jnp.tile(t2, W)[None, :]

    # bf16 banded weights (built once; grid-invariant inside the kernel).
    w1_band = _banded_conv_weights(params["w1"], W, jnp.bfloat16)
    w2_band = _banded_conv_weights(params["w2"], W, jnp.bfloat16)

    out_slab = _basic_block_v2_pallas(x_slab, s1_l, t1_l, w1_band, s2_l, t2_l, w2_band)
    return jnp.transpose(out_slab.reshape(B, H, W, C), (0, 3, 1, 2))   # back to NCHW


def basic_block_v2_reference(x_nchw, params, conv_dtype=jnp.float32):
    """Plain-JAX NCHW reference matching the PyTorch forward (BN in eval mode).

    conv_dtype=jnp.bfloat16 reproduces the kernel's MXU input precision (f32 accum).
    """
    eps = 1e-5

    def bn(x, g, b, m, v):
        s = (g / jnp.sqrt(v + eps))[None, :, None, None]
        t = (b - m * g / jnp.sqrt(v + eps))[None, :, None, None]
        return x * s + t

    def conv(x, w):
        return lax.conv_general_dilated(
            x.astype(conv_dtype), w.astype(conv_dtype), (1, 1), [(1, 1), (1, 1)],
            dimension_numbers=("NCHW", "OIHW", "NCHW"),
            preferred_element_type=jnp.float32)

    g1, b1, m1, v1 = params["bn1"]
    g2, b2, m2, v2 = params["bn2"]
    out = jnp.maximum(bn(x_nchw, g1, b1, m1, v1), 0.0)
    identity = x_nchw
    out = conv(out, params["w1"])
    out = jnp.maximum(bn(out, g2, b2, m2, v2), 0.0)
    out = conv(out, params["w2"])
    return out + identity


if __name__ == "__main__":
    # inplanes == planes == 8, stride = 1, W * C = 128 -> exactly lane-dense.
    B, C, H, W = 2, 8, 16, 16
    key = jax.random.PRNGKey(0)
    ks = jax.random.split(key, 11)

    x = jax.random.normal(ks[0], (B, C, H, W), jnp.float32)
    params = {
        "w1": jax.random.normal(ks[1], (C, C, 3, 3), jnp.float32) * 0.1,
        "w2": jax.random.normal(ks[2], (C, C, 3, 3), jnp.float32) * 0.1,
        "bn1": (
            jax.random.uniform(ks[3], (C,), jnp.float32, 0.5, 1.5),   # gamma
            jax.random.normal(ks[4], (C,), jnp.float32) * 0.1,        # beta
            jax.random.normal(ks[5], (C,), jnp.float32) * 0.1,        # running_mean
            jax.random.uniform(ks[6], (C,), jnp.float32, 0.5, 1.5),   # running_var
        ),
        "bn2": (
            jax.random.uniform(ks[7], (C,), jnp.float32, 0.5, 1.5),
            jax.random.normal(ks[8], (C,), jnp.float32) * 0.1,
            jax.random.normal(ks[9], (C,), jnp.float32) * 0.1,
            jax.random.uniform(ks[10], (C,), jnp.float32, 0.5, 1.5),
        ),
    }

    out = jax.block_until_ready(basic_block_v2(x, params))
    ref_mxu = jax.block_until_ready(
        basic_block_v2_reference(x, params, conv_dtype=jnp.bfloat16))  # matched precision
    ref_f32 = jax.block_until_ready(basic_block_v2_reference(x, params))

    assert out.shape == (B, C, H, W), out.shape
    # Tight check against a reference using the same bf16-input / f32-accum conv math.
    err_mxu = float(jnp.max(jnp.abs(out - ref_mxu)))
    assert jnp.allclose(out, ref_mxu, atol=5e-3, rtol=5e-3), err_mxu
    # Looser sanity check against the full-f32 reference (bf16 MXU inputs by design).
    err_f32 = float(jnp.max(jnp.abs(out - ref_f32)))
    assert jnp.allclose(out, ref_f32, atol=5e-2, rtol=5e-2), err_f32
    print("KERNEL_OK")
</pallas_src>

<mosaic_0001>
module attributes {stable_mosaic.version = 11 : i64} {
  func.func @_basic_block_v2_kernel(%arg0: i32, %arg1: memref<1x16x128xf32, #tpu.memory_space<vmem>>, %arg2: memref<1x128xf32, #tpu.memory_space<vmem>>, %arg3: memref<1x128xf32, #tpu.memory_space<vmem>>, %arg4: memref<3x128x128xbf16, #tpu.memory_space<vmem>>, %arg5: memref<1x128xf32, #tpu.memory_space<vmem>>, %arg6: memref<1x128xf32, #tpu.memory_space<vmem>>, %arg7: memref<3x128x128xbf16, #tpu.memory_space<vmem>>, %arg8: memref<1x16x128xf32, #tpu.memory_space<vmem>>, %arg9: memref<18x128xf32, #tpu.memory_space<vmem>>, %arg10: memref<18x128xf32, #tpu.memory_space<vmem>>) attributes {dimension_semantics = [#tpu.dimension_semantics<parallel>], iteration_bounds = array<i64: 2>, scalar_prefetch = 0 : i64, scratch_operands = 2 : i64, tpu.core_type = #tpu.core_type<tc>, window_params = [{transform_indices = @transform_0, window_bounds = array<i64: 1, 16, 128>}, {pipeline_mode = #tpu.pipeline_mode<synchronous>, transform_indices = @transform_1, window_bounds = array<i64: 1, 128>}, {pipeline_mode = #tpu.pipeline_mode<synchronous>, transform_indices = @transform_2, window_bounds = array<i64: 1, 128>}, {pipeline_mode = #tpu.pipeline_mode<synchronous>, transform_indices = @transform_3, window_bounds = array<i64: 3, 128, 128>}, {pipeline_mode = #tpu.pipeline_mode<synchronous>, transform_indices = @transform_4, window_bounds = array<i64: 1, 128>}, {pipeline_mode = #tpu.pipeline_mode<synchronous>, transform_indices = @transform_5, window_bounds = array<i64: 1, 128>}, {pipeline_mode = #tpu.pipeline_mode<synchronous>, transform_indices = @transform_6, window_bounds = array<i64: 3, 128, 128>}, {transform_indices = @transform_7, window_bounds = array<i64: 1, 16, 128>}]} {
    %cst = arith.constant 0.000000e+00 : f32
    %0 = vector.broadcast %cst : f32 to vector<1x128xf32>
    %c0 = arith.constant 0 : index
    %c0_0 = arith.constant 0 : index
    %1 = vector.load %arg9[%c0, %c0_0] : memref<18x128xf32, #tpu.memory_space<vmem>>, vector<1x128xf32>
    tpu.vector_store %arg9[%c0, %c0_0], %0 {strides = array<i32>} : memref<18x128xf32, #tpu.memory_space<vmem>>, vector<1x128xf32>,
    %c17 = arith.constant 17 : index
    %c0_1 = arith.constant 0 : index
    %2 = vector.load %arg9[%c17, %c0_1] : memref<18x128xf32, #tpu.memory_space<vmem>>, vector<1x128xf32>
    tpu.vector_store %arg9[%c17, %c0_1], %0 {strides = array<i32>} : memref<18x128xf32, #tpu.memory_space<vmem>>, vector<1x128xf32>,
    %c0_2 = arith.constant 0 : index
    %c0_3 = arith.constant 0 : index
    %3 = vector.load %arg10[%c0_2, %c0_3] : memref<18x128xf32, #tpu.memory_space<vmem>>, vector<1x128xf32>
    tpu.vector_store %arg10[%c0_2, %c0_3], %0 {strides = array<i32>} : memref<18x128xf32, #tpu.memory_space<vmem>>, vector<1x128xf32>,
    %c17_4 = arith.constant 17 : index
    %c0_5 = arith.constant 0 : index
    %4 = vector.load %arg10[%c17_4, %c0_5] : memref<18x128xf32, #tpu.memory_space<vmem>>, vector<1x128xf32>
    tpu.vector_store %arg10[%c17_4, %c0_5], %0 {strides = array<i32>} : memref<18x128xf32, #tpu.memory_space<vmem>>, vector<1x128xf32>,
    %c0_6 = arith.constant 0 : index
    %c0_7 = arith.constant 0 : index
    %c0_8 = arith.constant 0 : index
    %5 = vector.load %arg1[%c0_6, %c0_7, %c0_8] : memref<1x16x128xf32, #tpu.memory_space<vmem>>, vector<1x16x128xf32>
    %6 = vector.shape_cast %5 : vector<1x16x128xf32> to vector<16x128xf32>
    %c0_9 = arith.constant 0 : index
    %c0_10 = arith.constant 0 : index
    %7 = vector.load %arg2[%c0_9, %c0_10] : memref<1x128xf32, #tpu.memory_space<vmem>>, vector<1x128xf32>
    %8 = vector.shape_cast %7 : vector<1x128xf32> to vector<128xf32>
    %9 = vector.shape_cast %8 : vector<128xf32> to vector<1x128xf32>
    %10 = vector.broadcast %9 : vector<1x128xf32> to vector<16x128xf32>
    %11 = arith.mulf %6, %10 : vector<16x128xf32>
    %c0_11 = arith.constant 0 : index
    %c0_12 = arith.constant 0 : index
    %12 = vector.load %arg3[%c0_11, %c0_12] : memref<1x128xf32, #tpu.memory_space<vmem>>, vector<1x128xf32>
    %13 = vector.shape_cast %12 : vector<1x128xf32> to vector<128xf32>
    %14 = vector.shape_cast %13 : vector<128xf32> to vector<1x128xf32>
    %15 = vector.broadcast %14 : vector<1x128xf32> to vector<16x128xf32>
    %16 = arith.addf %11, %15 : vector<16x128xf32>
    %cst_13 = arith.constant 0.000000e+00 : f32
    %17 = vector.broadcast %cst_13 : f32 to vector<16x128xf32>
    %18 = arith.maximumf %16, %17 : vector<16x128xf32>
    %c1 = arith.constant 1 : index
    %c0_14 = arith.constant 0 : index
    %19 = vector.load %arg9[%c1, %c0_14] : memref<18x128xf32, #tpu.memory_space<vmem>>, vector<16x128xf32>
    tpu.vector_store %arg9[%c1, %c0_14], %18 {strides = array<i32>} : memref<18x128xf32, #tpu.memory_space<vmem>>, vector<16x128xf32>,
    %c0_15 = arith.constant 0 : index
    %c0_16 = arith.constant 0 : index
    %20 = vector.load %arg9[%c0_15, %c0_16] : memref<18x128xf32, #tpu.memory_space<vmem>>, vector<16x128xf32>
    %21 = arith.truncf %20 : vector<16x128xf32> to vector<16x128xbf16>
    %c0_17 = arith.constant 0 : index
    %c0_18 = arith.constant 0 : index
    %c0_19 = arith.constant 0 : index
    %22 = vector.load %arg4[%c0_17, %c0_18, %c0_19] : memref<3x128x128xbf16, #tpu.memory_space<vmem>>, vector<1x128x128xbf16>
    %23 = vector.shape_cast %22 : vector<1x128x128xbf16> to vector<128x128xbf16>
    %cst_20 = arith.constant dense<0.000000e+00> : vector<16x128xf32>
    %24 = tpu.matmul %21, %23, %cst_20 {dimension_numbers = #tpu.dot_dimension_numbers<[1], [0], [0], [1], [0, 0, 1, 1], [], []>} : vector<16x128xbf16>, vector<128x128xbf16>, vector<16x128xf32> -> vector<16x128xf32>
    %c1_21 = arith.constant 1 : index
    %c0_22 = arith.constant 0 : index
    %25 = vector.load %arg9[%c1_21, %c0_22] : memref<18x128xf32, #tpu.memory_space<vmem>>, vector<16x128xf32>
    %26 = arith.truncf %25 : vector<16x128xf32> to vector<16x128xbf16>
    %c1_23 = arith.constant 1 : index
    %c0_24 = arith.constant 0 : index
    %c0_25 = arith.constant 0 : index
    %27 = vector.load %arg4[%c1_23, %c0_24, %c0_25] : memref<3x128x128xbf16, #tpu.memory_space<vmem>>, vector<1x128x128xbf16>
    %28 = vector.shape_cast %27 : vector<1x128x128xbf16> to vector<128x128xbf16>
    %cst_26 = arith.constant dense<0.000000e+00> : vector<16x128xf32>
    %29 = tpu.matmul %26, %28, %cst_26 {dimension_numbers = #tpu.dot_dimension_numbers<[1], [0], [0], [1], [0, 0, 1, 1], [], []>} : vector<16x128xbf16>, vector<128x128xbf16>, vector<16x128xf32> -> vector<16x128xf32>
    %30 = arith.addf %24, %29 : vector<16x128xf32>
    %c2 = arith.constant 2 : index
    %c0_27 = arith.constant 0 : index
    %31 = vector.load %arg9[%c2, %c0_27] : memref<18x128xf32, #tpu.memory_space<vmem>>, vector<16x128xf32>
    %32 = arith.truncf %31 : vector<16x128xf32> to vector<16x128xbf16>
    %c2_28 = arith.constant 2 : index
    %c0_29 = arith.constant 0 : index
    %c0_30 = arith.constant 0 : index
    %33 = vector.load %arg4[%c2_28, %c0_29, %c0_30] : memref<3x128x128xbf16, #tpu.memory_space<vmem>>, vector<1x128x128xbf16>
    %34 = vector.shape_cast %33 : vector<1x128x128xbf16> to vector<128x128xbf16>
    %cst_31 = arith.constant dense<0.000000e+00> : vector<16x128xf32>
    %35 = tpu.matmul %32, %34, %cst_31 {dimension_numbers = #tpu.dot_dimension_numbers<[1], [0], [0], [1], [0, 0, 1, 1], [], []>} : vector<16x128xbf16>, vector<128x128xbf16>, vector<16x128xf32> -> vector<16x128xf32>
    %36 = arith.addf %30, %35 : vector<16x128xf32>
    %c0_32 = arith.constant 0 : index
    %c0_33 = arith.constant 0 : index
    %37 = vector.load %arg5[%c0_32, %c0_33] : memref<1x128xf32, #tpu.memory_space<vmem>>, vector<1x128xf32>
    %38 = vector.shape_cast %37 : vector<1x128xf32> to vector<128xf32>
    %39 = vector.shape_cast %38 : vector<128xf32> to vector<1x128xf32>
    %40 = vector.broadcast %39 : vector<1x128xf32> to vector<16x128xf32>
    %41 = arith.mulf %36, %40 : vector<16x128xf32>
    %c0_34 = arith.constant 0 : index
    %c0_35 = arith.constant 0 : index
    %42 = vector.load %arg6[%c0_34, %c0_35] : memref<1x128xf32, #tpu.memory_space<vmem>>, vector<1x128xf32>
    %43 = vector.shape_cast %42 : vector<1x128xf32> to vector<128xf32>
    %44 = vector.shape_cast %43 : vector<128xf32> to vector<1x128xf32>
    %45 = vector.broadcast %44 : vector<1x128xf32> to vector<16x128xf32>
    %46 = arith.addf %41, %45 : vector<16x128xf32>
    %cst_36 = arith.constant 0.000000e+00 : f32
    %47 = vector.broadcast %cst_36 : f32 to vector<16x128xf32>
    %48 = arith.maximumf %46, %47 : vector<16x128xf32>
    %c1_37 = arith.constant 1 : index
    %c0_38 = arith.constant 0 : index
    %49 = vector.load %arg10[%c1_37, %c0_38] : memref<18x128xf32, #tpu.memory_space<vmem>>, vector<16x128xf32>
    tpu.vector_store %arg10[%c1_37, %c0_38], %48 {strides = array<i32>} : memref<18x128xf32, #tpu.memory_space<vmem>>, vector<16x128xf32>,
    %c0_39 = arith.constant 0 : index
    %c0_40 = arith.constant 0 : index
    %50 = vector.load %arg10[%c0_39, %c0_40] : memref<18x128xf32, #tpu.memory_space<vmem>>, vector<16x128xf32>
    %51 = arith.truncf %50 : vector<16x128xf32> to vector<16x128xbf16>
    %c0_41 = arith.constant 0 : index
    %c0_42 = arith.constant 0 : index
    %c0_43 = arith.constant 0 : index
    %52 = vector.load %arg7[%c0_41, %c0_42, %c0_43] : memref<3x128x128xbf16, #tpu.memory_space<vmem>>, vector<1x128x128xbf16>
    %53 = vector.shape_cast %52 : vector<1x128x128xbf16> to vector<128x128xbf16>
    %cst_44 = arith.constant dense<0.000000e+00> : vector<16x128xf32>
    %54 = tpu.matmul %51, %53, %cst_44 {dimension_numbers = #tpu.dot_dimension_numbers<[1], [0], [0], [1], [0, 0, 1, 1], [], []>} : vector<16x128xbf16>, vector<128x128xbf16>, vector<16x128xf32> -> vector<16x128xf32>
    %c1_45 = arith.constant 1 : index
    %c0_46 = arith.constant 0 : index
    %55 = vector.load %arg10[%c1_45, %c0_46] : memref<18x128xf32, #tpu.memory_space<vmem>>, vector<16x128xf32>
    %56 = arith.truncf %55 : vector<16x128xf32> to vector<16x128xbf16>
    %c1_47 = arith.constant 1 : index
    %c0_48 = arith.constant 0 : index
    %c0_49 = arith.constant 0 : index
    %57 = vector.load %arg7[%c1_47, %c0_48, %c0_49] : memref<3x128x128xbf16, #tpu.memory_space<vmem>>, vector<1x128x128xbf16>
    %58 = vector.shape_cast %57 : vector<1x128x128xbf16> to vector<128x128xbf16>
    %cst_50 = arith.constant dense<0.000000e+00> : vector<16x128xf32>
    %59 = tpu.matmul %56, %58, %cst_50 {dimension_numbers = #tpu.dot_dimension_numbers<[1], [0], [0], [1], [0, 0, 1, 1], [], []>} : vector<16x128xbf16>, vector<128x128xbf16>, vector<16x128xf32> -> vector<16x128xf32>
    %60 = arith.addf %54, %59 : vector<16x128xf32>
    %c2_51 = arith.constant 2 : index
    %c0_52 = arith.constant 0 : index
    %61 = vector.load %arg10[%c2_51, %c0_52] : memref<18x128xf32, #tpu.memory_space<vmem>>, vector<16x128xf32>
    %62 = arith.truncf %61 : vector<16x128xf32> to vector<16x128xbf16>
    %c2_53 = arith.constant 2 : index
    %c0_54 = arith.constant 0 : index
    %c0_55 = arith.constant 0 : index
    %63 = vector.load %arg7[%c2_53, %c0_54, %c0_55] : memref<3x128x128xbf16, #tpu.memory_space<vmem>>, vector<1x128x128xbf16>
    %64 = vector.shape_cast %63 : vector<1x128x128xbf16> to vector<128x128xbf16>
    %cst_56 = arith.constant dense<0.000000e+00> : vector<16x128xf32>
    %65 = tpu.matmul %62, %64, %cst_56 {dimension_numbers = #tpu.dot_dimension_numbers<[1], [0], [0], [1], [0, 0, 1, 1], [], []>} : vector<16x128xbf16>, vector<128x128xbf16>, vector<16x128xf32> -> vector<16x128xf32>
    %66 = arith.addf %60, %65 : vector<16x128xf32>
    %67 = arith.addf %66, %6 : vector<16x128xf32>
    %c0_57 = arith.constant 0 : index
    %c0_58 = arith.constant 0 : index
    %c0_59 = arith.constant 0 : index
    %68 = vector.load %arg8[%c0_57, %c0_58, %c0_59] : memref<1x16x128xf32, #tpu.memory_space<vmem>>, vector<1x16x128xf32>
    %69 = vector.shape_cast %68 : vector<1x16x128xf32> to vector<16x128xf32>
    %70 = vector.shape_cast %67 : vector<16x128xf32> to vector<1x16x128xf32>
    tpu.vector_store %arg8[%c0_57, %c0_58, %c0_59], %70 {strides = array<i32>} : memref<1x16x128xf32, #tpu.memory_space<vmem>>, vector<1x16x128xf32>,
    return
  }
  func.func @transform_0(%arg0: i32) -> (i32, i32, i32) {
    %c0_i32 = arith.constant 0 : i32
    %c0_i32_0 = arith.constant 0 : i32
    %c0_i32_1 = arith.constant 0 : i32
    return %arg0, %c0_i32, %c0_i32_0 : i32, i32, i32
  }
  func.func @transform_1(%arg0: i32) -> (i32, i32) {
    %c0_i32 = arith.constant 0 : i32
    %c0_i32_0 = arith.constant 0 : i32
    %c0_i32_1 = arith.constant 0 : i32
    return %c0_i32, %c0_i32_0 : i32, i32
  }
  func.func @transform_2(%arg0: i32) -> (i32, i32) {
    %c0_i32 = arith.constant 0 : i32
    %c0_i32_0 = arith.constant 0 : i32
    %c0_i32_1 = arith.constant 0 : i32
    return %c0_i32, %c0_i32_0 : i32, i32
  }
  func.func @transform_3(%arg0: i32) -> (i32, i32, i32) {
    %c0_i32 = arith.constant 0 : i32
    %c0_i32_0 = arith.constant 0 : i32
    %c0_i32_1 = arith.constant 0 : i32
    %c0_i32_2 = arith.constant 0 : i32
    return %c0_i32, %c0_i32_0, %c0_i32_1 : i32, i32, i32
  }
  func.func @transform_4(%arg0: i32) -> (i32, i32) {
    %c0_i32 = arith.constant 0 : i32
    %c0_i32_0 = arith.constant 0 : i32
    %c0_i32_1 = arith.constant 0 : i32
    return %c0_i32, %c0_i32_0 : i32, i32
  }
  func.func @transform_5(%arg0: i32) -> (i32, i32) {
    %c0_i32 = arith.constant 0 : i32
    %c0_i32_0 = arith.constant 0 : i32
    %c0_i32_1 = arith.constant 0 : i32
    return %c0_i32, %c0_i32_0 : i32, i32
  }
  func.func @transform_6(%arg0: i32) -> (i32, i32, i32) {
    %c0_i32 = arith.constant 0 : i32
    %c0_i32_0 = arith.constant 0 : i32
    %c0_i32_1 = arith.constant 0 : i32
    %c0_i32_2 = arith.constant 0 : i32
    return %c0_i32, %c0_i32_0, %c0_i32_1 : i32, i32, i32
  }
  func.func @transform_7(%arg0: i32) -> (i32, i32, i32) {
    %c0_i32 = arith.constant 0 : i32
    %c0_i32_0 = arith.constant 0 : i32
    %c0_i32_1 = arith.constant 0 : i32
    return %arg0, %c0_i32, %c0_i32_0 : i32, i32, i32
  }
}

</mosaic_0001>

<bundles_post_ra>
// kernel: tile.23
= control target key start
LH: loop header
LB: loop body
LE: loop exit
PB: predicated region body
PF: predicated region fallthrough
CT: control target
= control target key end

     0   :  { %s28_s0 = inlined_call_operand.vmem [shape: f32[8], index: 0, kind: input, shape index: {}]   ;;  %s29_s1 = inlined_call_operand.vmem [shape: f32[16,8], index: 1, kind: output, shape index: {}]  }
   0x1   :  { %v4_v0 = vld [vmem:[%s28_s0] ss:$0 sm:$0xff] }
   0x2   :  { %5 = vst [vmem:[%s29_s1] sm:$0xff] %v4_v0  ;;  %8 = vst [vmem:[%s29_s1 + $0x8] sm:$0xff] %v4_v0 }

// kernel: tile.24
= control target key start
LH: loop header
LB: loop body
LE: loop exit
PB: predicated region body
PF: predicated region fallthrough
CT: control target
= control target key end

     0   :  { %s133_s10 = smov 120   ;;  %s134_s11 = smov 104   ;;  %vm3_vm0 = vcmask 64512   ;;  %vm9_vm1 = vcmask 1048512   ;;  %vm15_vm2 = vcmask 982912   ;;  %vm21_vm3 = vcmask 917312   ;;  %s209_s0 = inlined_call_operand.vmem [shape: f32[16,8], index: 0, kind: input, shape index: {}]   ;;  %s210_s1 = inlined_call_operand.vmem [shape: f32[1,128], index: 1, kind: output, shape index: {}]  }
   0x1   :  { %v103_v0 = vld [vmem:[%s209_s0 + $0xf] sm:$0x1]   ;;  %v105_v1 = vld [vmem:[%s209_s0 + $0xd] sm:$0x1]   ;;  %v104_v2 = vld [vmem:[%s209_s0 + $0xe] sm:$0x1]  }
   0x2   :  { %7 = vrot.lane.b32.xlu0 %v103_v0, %s133_s10  ;;  %19 = vrot.lane.b32.xlu1 %v105_v1, %s134_s11  ;;  %v106_v3 = vld [vmem:[%s209_s0 + $0xc] sm:$0x1]   ;;  %s135_s16 = smov 112   ;;  %s136_s17 = smov 96   ;;  %v107_v4 = vld [vmem:[%s209_s0 + $0xb] sm:$0x1]  }
   0x3   :  { %v108_v5 = vld [vmem:[%s209_s0 + $0xa] sm:$0x1]   ;;  %v2_v6 = vld [vmem:[%s209_s0] sm:$0x1]   ;;  %s137_s24 = smov 88   ;;  %s138_s25 = smov 80  }
   0x4   :  { %4 = vst.msk [vmem:[#allocation0] sm:$0x1] %vm3_vm0, %v2_v6   ;;  %v109_v7 = vld [vmem:[%s209_s0 + $0x9] sm:$0x1]   ;;  %v110_v8 = vld [vmem:[%s209_s0 + $0x8] sm:$0x1]  }
   0x5   :  { %s139_s30 = smov 72   ;;  %s140_s2 = smov 64   ;;  %v111_v9 = vld [vmem:[%s209_s0 + $0x7] sm:$0x1]   ;;  %v112_v10 = vld [vmem:[%s209_s0 + $0x6] sm:$0x1]  }
   0x6   :  { %13 = vrot.lane.b32.xlu0 %v104_v2, %s135_s16  ;;  %25 = vrot.lane.b32.xlu1 %v106_v3, %s136_s17  ;;  %s141_s7 = smov 56   ;;  %s142_s8 = smov 48   ;;  %v113_v11 = vld [vmem:[%s209_s0 + $0x5] sm:$0x1]   ;;  %v114_v12 = vld [vmem:[%s209_s0 + $0x4] sm:$0x1]  }
   0x7   :  { %s143_s13 = smov 40   ;;  %s144_s14 = smov 32   ;;  %v115_v13 = vld [vmem:[%s209_s0 + $0x3] sm:$0x1]   ;;  %v116_v14 = vld [vmem:[%s209_s0 + $0x2] sm:$0x1]  }
   0x8   :  { %s145_s19 = smov 24   ;;  %s146_s20 = smov 16   ;;  %v117_v15 = vld [vmem:[%s209_s0 + $0x1] sm:$0x1]   ;;  %vm27_vm4 = vcmask 851712   ;;  %vm33_vm5 = vcmask 786112  }
   0x9   :  { %s147_s0 = smov 8   ;;  %vm39_vm6 = vcmask 720512   ;;  %vm45_vm7 = vcmask 654912   ;;  %vm51_vm8 = vcmask 589312   ;;  %vm57_vm9 = vcmask 523712  }
   0xa   :  { %31 = vrot.lane.b32.xlu0 %v107_v4, %s137_s24  ;;  %37 = vrot.lane.b32.xlu1 %v108_v5, %s138_s25  ;;  %vm63_vm10 = vcmask 458112   ;;  %vm69_vm11 = vcmask 392512   ;;  %vm75_vm12 = vcmask 326912   ;;  %vm81_vm13 = vcmask 261312  }
   0xb   :  { %vm87_vm14 = vcmask 195712   ;;  %vm93_vm15 = vcmask 130112  }
   0xe   :  { %43 = vrot.lane.b32.xlu0 %v109_v7, %s139_s30  ;;  %49 = vrot.lane.b32.xlu1 %v110_v8, %s140_s2 }
  0x12   :  { %55 = vrot.lane.b32.xlu0 %v111_v9, %s141_s7  ;;  %61 = vrot.lane.b32.xlu1 %v112_v10, %s142_s8 }
  0x16   :  { %67 = vrot.lane.b32.xlu0 %v113_v11, %s143_s13  ;;  %73 = vrot.lane.b32.xlu1 %v114_v12, %s144_s14 }
  0x1a   :  { %79 = vrot.lane.b32.xlu0 %v115_v13, %s145_s19  ;;  %85 = vrot.lane.b32.xlu1 %v116_v14, %s146_s20 }
  0x1e   :  { %91 = vrot.lane.b32.xlu0 %v117_v15, %s147_s0 }
  0x74   :  { %v8_v16 = vpop.permute.xlu0 %7   ;;  %v20_v17 = vpop.permute.xlu1 %19  }
  0x75   :  { %10 = vst.msk [vmem:[#allocation0] sm:$0x1] %vm9_vm1, %v8_v16  }
  0x78   :  { %v14_v18 = vpop.permute.xlu0 %13   ;;  %v26_v19 = vpop.permute.xlu1 %25  }
  0x79   :  { %16 = vst.msk [vmem:[#allocation0] sm:$0x1] %vm15_vm2, %v14_v18  }
  0x7a   :  { %22 = vst.msk [vmem:[#allocation0] sm:$0x1] %vm21_vm3, %v20_v17  }
  0x7b   :  { %28 = vst.msk [vmem:[#allocation0] sm:$0x1] %vm27_vm4, %v26_v19  }
  0x7c   :  { %v32_v20 = vpop.permute.xlu0 %31   ;;  %v38_v21 = vpop.permute.xlu1 %37  }
  0x7d   :  { %34 = vst.msk [vmem:[#allocation0] sm:$0x1] %vm33_vm5, %v32_v20  }
  0x7e   :  { %40 = vst.msk [vmem:[#allocation0] sm:$0x1] %vm39_vm6, %v38_v21  }
  0x80   :  { %v44_v22 = vpop.permute.xlu0 %43   ;;  %v50_v23 = vpop.permute.xlu1 %49  }
  0x81   :  { %46 = vst.msk [vmem:[#allocation0] sm:$0x1] %vm45_vm7, %v44_v22  }
  0x82   :  { %52 = vst.msk [vmem:[#allocation0] sm:$0x1] %vm51_vm8, %v50_v23  }
  0x84   :  { %v56_v24 = vpop.permute.xlu0 %55   ;;  %v62_v25 = vpop.permute.xlu1 %61  }
  0x85   :  { %58 = vst.msk [vmem:[#allocation0] sm:$0x1] %vm57_vm9, %v56_v24  }
  0x86   :  { %64 = vst.msk [vmem:[#allocation0] sm:$0x1] %vm63_vm10, %v62_v25  }
  0x88   :  { %v68_v26 = vpop.permute.xlu0 %67   ;;  %v74_v27 = vpop.permute.xlu1 %73  }
  0x89   :  { %70 = vst.msk [vmem:[#allocation0] sm:$0x1] %vm69_vm11, %v68_v26  }
  0x8a   :  { %76 = vst.msk [vmem:[#allocation0] sm:$0x1] %vm75_vm12, %v74_v27  }
  0x8c   :  { %v80_v28 = vpop.permute.xlu0 %79   ;;  %v86_v29 = vpop.permute.xlu1 %85  }
  0x8d   :  { %82 = vst.msk [vmem:[#allocation0] sm:$0x1] %vm81_vm13, %v80_v28  }
  0x8e   :  { %88 = vst.msk [vmem:[#allocation0] sm:$0x1] %vm87_vm14, %v86_v29  }
  0x90   :  { %v92_v30 = vpop.permute.xlu0 %91  }
  0x91   :  { %94 = vst.msk [vmem:[#allocation0] sm:$0x1] %vm93_vm15, %v92_v30  }
  0x98   :  { %v99_v31 = vld [vmem:[#allocation0] sm:$0x1] }
  0x99   :  { %102 = vst [vmem:[%s210_s1] sm:$0x1] %v99_v31 }

// kernel: basic_block_v2.1
= control target key start
LH: loop header
LB: loop body
LE: loop exit
PB: predicated region body
PF: predicated region fallthrough
CT: control target
= control target key end

     0   :  { %s1456_s24 = smov 0   ;;  %s1708_s0 = inlined_call_operand.vmem [shape: f32[2,16,128], index: 0, kind: input, shape index: {}]   ;;  %s1709_s1 = inlined_call_operand.vmem [shape: f32[1,128], index: 1, kind: input, shape index: {}]   ;;  %s1710_s2 = inlined_call_operand.vmem [shape: f32[1,128], index: 2, kind: input, shape index: {}]   ;;  %s1711_s3 = inlined_call_operand.vmem [shape: bf16[3,128,128], index: 3, kind: input, shape index: {}]   ;;  %s1712_s4 = inlined_call_operand.vmem [shape: f32[1,128], index: 4, kind: input, shape index: {}]   ;;  %s1713_s5 = inlined_call_operand.vmem [shape: f32[1,128], index: 5, kind: input, shape index: {}]   ;;  %s1714_s6 = inlined_call_operand.vmem [shape: bf16[3,128,128], index: 6, kind: input, shape index: {}]   ;;  %s1715_s7 = inlined_call_operand.vmem [shape: f32[2,16,128], index: 7, kind: output, shape index: {}]  }
   0x1 LB: > { %s1045_s25 = sadd.s32 4294967295, %s1412_s24   ;;  %p1049_p0 = scmp.ge.s32.totalorder %s1412_s24, 1  ;;  %s1412_s24 = sphi %s1456_s24, %s17_s24  }
   0x2   : > { %p237_p1 = scmp.lt.s32.totalorder %s1412_s24, 3 }
   0x4   : > { %p238_p2 = pnand %p1049_p0, %p237_p1 }
   0x5   : > { %p269_p3 = scmp.lt.s32.totalorder (!%p238_p2), %s1045_s25, 1 }
   0x6   : > { %241 = sbr.rel (%p238_p2) target bundleno = 517 (0x205), region = 48 }
   0xb   : > { %v1358_v0 = vld [vmem:[%s1711_s3 + $0x78] sm:$0xff]   ;;  %v1414_v1 = vmov 0.0   ;;  %v1360_v3 = vld [vmem:[%s1711_s3 + $0x70] sm:$0xff]   ;;  %vm1415_vm0 = vmmov 0   ;;  %v1362_v5 = vld [vmem:[%s1711_s3 + $0x68] sm:$0xff]   ;;  %s1717_s25 = smov (!%p269_p3, %s1045_s25), 1 }
   0xc   : > { %1228 = vmatprep.subr.bf16.mxu0 %v1414_v1  ;;  %280 = vst [vmem:[#allocation2] sm:$0x1] %v1414_v1  ;;  %281 = vst [vmem:[#allocation2 + $0x11] sm:$0x1] %v1414_v1  ;;  %1248 = vmatprep.subr.bf16.mxu1 %v1414_v1  ;;  %v1359_v2 = vld [vmem:[%s1711_s3 + $0x38] sm:$0xff]   ;;  %v1361_v4 = vld [vmem:[%s1711_s3 + $0x30] sm:$0xff]  }
   0xd   : > { %282 = vst [vmem:[#allocation3] sm:$0x1] %v1414_v1  ;;  %283 = vst [vmem:[#allocation3 + $0x11] sm:$0x1] %v1414_v1  ;;  %1229 = vmatpush3.bf16.msra.mxu0 %v1358_v0  ;;  %1244 = vmatprep.mubr.msk.bf16.mxu0 %vm1415_vm0, %v1414_v1  ;;  %v1363_v6 = vld [vmem:[%s1711_s3 + $0x28] sm:$0xff]   ;;  %v1364_v7 = vld [vmem:[%s1711_s3 + $0x60] sm:$0xff]  }
   0xe   : > { %1249 = vmatpush3.bf16.msra.mxu1 %v1359_v2  ;;  %1230 = vmatprep.subr.bf16.mxu0 %v1414_v1  ;;  %s1172_s17 = sshll.u32 %s1717_s25, 4  ;;  %v1365_v8 = vld [vmem:[%s1711_s3 + $0x20] sm:$0xff]   ;;  %v1366_v9 = vld [vmem:[%s1711_s3 + $0x58] sm:$0xff]   ;;  %v1368_v17 = vld [vmem:[%s1711_s3 + $0x50] sm:$0xff]  }
   0xf   : > { %1250 = vmatprep.subr.bf16.mxu1 %v1414_v1  ;;  %1264 = vmatprep.mubr.msk.bf16.mxu1 %vm1415_vm0, %v1414_v1  ;;  %s273_s22 = scalar_lea.vmem %s1708_s0, %s1172_s17  ;;  %v1367_v10 = vld [vmem:[%s1711_s3 + $0x18] sm:$0xff]   ;;  %v1054_v13 = vld [vmem:[%s1709_s1] ss:$0 sm:$0xff]  ;;  %v1369_v18 = vld [vmem:[%s1711_s3 + $0x10] sm:$0xff]   ;;  %s278_s12 = scalar_lea.vmem %s1715_s7, %s1172_s17 }
  0x10   : > { %v1520_v11 = vld [vmem:[%s273_s22] sm:$0xff]  ;;  %v1522_v12 = vld [vmem:[%s273_s22 + $0x8] sm:$0xff]  ;;  %v1374_v30 = vld [vmem:[%s1711_s3 + $0xb8] sm:$0xff]  }
  0x11   : > { %1231 = vmatpush3.bf16.msra.mxu0 %v1360_v3  ;;  %v293_v14 = vmul.f32 %v1054_v13, %v1520_v11  ;;  %v294_v15 = vmul.f32 %v1054_v13, %v1522_v12  ;;  %v1055_v16 = vld [vmem:[%s1710_s2] ss:$0 sm:$0xff]  ;;  %v1370_v21 = vld [vmem:[%s1711_s3 + $0x48] sm:$0xff]   ;;  %v1375_v32 = vld [vmem:[%s1711_s3 + $0xb0] sm:$0xff]  }
  0x12   : > { %1251 = vmatpush3.bf16.msra.mxu1 %v1361_v4  ;;  %1232 = vmatprep.subr.bf16.mxu0 %v1414_v1  ;;  %v1371_v24 = vld [vmem:[%s1711_s3 + $0x8] sm:$0xff]   ;;  %v1372_v25 = vld [vmem:[%s1711_s3 + $0x40] sm:$0xff]   ;;  %v1378_v35 = vld [vmem:[%s1711_s3 + $0x98] sm:$0xff]  }
  0x13   : > { %1252 = vmatprep.subr.bf16.mxu1 %v1414_v1  ;;  %v302_v19 = vadd.f32 %v1055_v16, %v293_v14  ;;  %v303_v20 = vadd.f32 %v1055_v16, %v294_v15  ;;  %v1373_v26 = vld [vmem:[%s1711_s3] sm:$0xff]   ;;  %v1376_v33 = vld [vmem:[%s1711_s3 + $0xa8] sm:$0xff]   ;;  %v1379_v36 = vld [vmem:[%s1711_s3 + $0x90] sm:$0xff]  }
  0x14   : > { %v1377_v34 = vld [vmem:[%s1711_s3 + $0xa0] sm:$0xff]   ;;  %v1380_v37 = vld [vmem:[%s1711_s3 + $0x88] sm:$0xff]   ;;  %v1382_v42 = vld [vmem:[%s1714_s6 + $0x78] sm:$0xff]  }
  0x15   : > { %1233 = vmatpush3.bf16.msra.mxu0 %v1362_v5  ;;  %v304_v22 = vmax.f32 %v302_v19, 0.0  ;;  %v305_v23 = vmax.f32 %v303_v20, 0.0  ;;  %v1381_v38 = vld [vmem:[%s1711_s3 + $0x80] sm:$0xff]   ;;  %v1383_v43 = vld [vmem:[%s1714_s6 + $0x38] sm:$0xff]   ;;  %v1384_v44 = vld [vmem:[%s1714_s6 + $0x70] sm:$0xff]  }
  0x16   : > { %1253 = vmatpush3.bf16.msra.mxu1 %v1363_v6  ;;  %1234 = vmatprep.subr.bf16.mxu0 %v1414_v1  ;;  %v1385_v45 = vld [vmem:[%s1714_s6 + $0x30] sm:$0xff]   ;;  %v1386_v46 = vld [vmem:[%s1714_s6 + $0x68] sm:$0xff]   ;;  %v1388_v47 = vld [vmem:[%s1714_s6 + $0x60] sm:$0xff]  }
  0x17   : > { %1254 = vmatprep.subr.bf16.mxu1 %v1414_v1  ;;  %306 = vst [vmem:[#allocation2 + $0x1] sm:$0xff] %v304_v22  ;;  %307 = vst [vmem:[#allocation2 + $0x9] sm:$0xff] %v305_v23  ;;  %v329_v27 = vpack.c.bf16 %v305_v23, %v304_v22  ;;  %v1390_v48 = vld [vmem:[%s1714_s6 + $0x58] sm:$0xff]   ;;  %v1387_v49 = vld [vmem:[%s1714_s6 + $0x28] sm:$0xff]  }
  0x18   : > { %v1392_v50 = vld [vmem:[%s1714_s6 + $0x50] sm:$0xff]   ;;  %v1389_v51 = vld [vmem:[%s1714_s6 + $0x20] sm:$0xff]   ;;  %v1394_v52 = vld [vmem:[%s1714_s6 + $0x48] sm:$0xff]  }
  0x19   : > { %1235 = vmatpush3.bf16.msra.mxu0 %v1364_v7  ;;  %v1391_v53 = vld [vmem:[%s1714_s6 + $0x18] sm:$0xff]   ;;  %v1396_v54 = vld [vmem:[%s1714_s6 + $0x40] sm:$0xff]   ;;  %v1393_v55 = vld [vmem:[%s1714_s6 + $0x10] sm:$0xff]  }
  0x1a   : > { %1255 = vmatpush3.bf16.msra.mxu1 %v1365_v8  ;;  %1236 = vmatprep.subr.bf16.mxu0 %v1414_v1  ;;  %v1395_v56 = vld [vmem:[%s1714_s6 + $0x8] sm:$0xff]   ;;  %v1397_v57 = vld [vmem:[%s1714_s6] sm:$0xff]   ;;  %v1399_v23 = vld [vmem:[%s1714_s6 + $0xb0] sm:$0xff]  }
  0x1b   : > { %1256 = vmatprep.subr.bf16.mxu1 %v1414_v1  ;;  %v1112_v5 = vld [vmem:[%s1712_s4] ss:$0 sm:$0xff] }
  0x1c   : > { %v1113_v7 = vld [vmem:[%s1713_s5] ss:$0 sm:$0xff] }
  0x1d   : > { %1237 = vmatpush3.bf16.msra.mxu0 %v1366_v9 }
  0x1e   : > { %1257 = vmatpush3.bf16.msra.mxu1 %v1367_v10  ;;  %1238 = vmatprep.subr.bf16.mxu0 %v1414_v1  ;;  %v308_v28 = vld [vmem:[#allocation2] sm:$0xff]  ;;  %v309_v29 = vld [vmem:[#allocation2 + $0x8] sm:$0xff] }
  0x1f   : > { %1258 = vmatprep.subr.bf16.mxu1 %v1414_v1  ;;  %v310_v31 = vpack.c.bf16 %v309_v29, %v308_v28  ;;  %v525_v39 = vld [vmem:[#allocation2 + $0x2] sm:$0xff]  ;;  %v526_v40 = vld [vmem:[#allocation2 + $0xa] sm:$0xff]  ;;  %v1402_v29 = vld [vmem:[%s1714_s6 + $0x98] sm:$0xff]  }
  0x20   : > { %v527_v41 = vpack.c.bf16 %v526_v40, %v525_v39  ;;  %v1401_v28 = vld [vmem:[%s1714_s6 + $0xa0] sm:$0xff]  }
  0x21   : > { %1239 = vmatpush3.bf16.msra.mxu0 %v1368_v17 }
  0x22   : > { %1259 = vmatpush3.bf16.msra.mxu1 %v1369_v18  ;;  %1240 = vmatprep.subr.bf16.mxu0 %v1414_v1 }
  0x23   : > { %1260 = vmatprep.subr.bf16.mxu1 %v1414_v1 }
  0x25   : > { %1241 = vmatpush3.bf16.msra.mxu0 %v1370_v21  ;;  %v1398_v21 = vld [vmem:[%s1714_s6 + $0xb8] sm:$0xff]  }
  0x26   : > { %1261 = vmatpush3.bf16.msra.mxu1 %v1371_v24  ;;  %1242 = vmatprep.subr.bf16.mxu0 %v1414_v1 }
  0x27   : > { %1262 = vmatprep.subr.bf16.mxu1 %v1414_v1 }
  0x29   : > { %1243 = vmatpush3.bf16.msra.mxu0 %v1372_v25 }
  0x2a   : > { %1263 = vmatpush3.bf16.msra.mxu1 %v1373_v26  ;;  %1268 = vmatprep.subr.bf16.mxu0 %v1414_v1  ;;  %v1400_v26 = vld [vmem:[%s1714_s6 + $0xa8] sm:$0xff]  }
  0x2b   : > { %1288 = vmatprep.subr.bf16.mxu1 %v1414_v1 }
  0x2c   : > { %1245 = vmatmul.mubr.bf16.vlgmr.msra.gmra.mxu0 %v329_v27 }
  0x2d   : > { %1265 = vmatmul.mubr.bf16.vlgmr.msra.gmra.mxu1 %v310_v31  ;;  %1269 = vmatpush3.bf16.msra.mxu0 %v1374_v30  ;;  %v1403_v30 = vld [vmem:[%s1714_s6 + $0x90] sm:$0xff]   ;;  %v1404_v31 = vld [vmem:[%s1714_s6 + $0x88] sm:$0xff]  }
  0x2e   : > { %1270 = vmatprep.subr.bf16.mxu0 %v1414_v1  ;;  %1284 = vmatprep.mubr.msk.bf16.mxu0 %vm1415_vm0, %v1414_v1 }
  0x2f   : > { %1304 = vmatprep.mubr.msk.bf16.mxu1 %vm1415_vm0, %v1414_v1  ;;  %1289 = vmatpush3.bf16.msra.mxu1 %v1382_v42 }
  0x30   : > { %1290 = vmatprep.subr.bf16.mxu1 %v1414_v1 }
  0x31   : > { %1271 = vmatpush3.bf16.msra.mxu0 %v1375_v32  ;;  %v1405_v32 = vld [vmem:[%s1714_s6 + $0x80] sm:$0xff]  }
  0x32   : > { %1272 = vmatprep.subr.bf16.mxu0 %v1414_v1 }
  0x33   : > { %1291 = vmatpush3.bf16.msra.mxu1 %v1384_v44 }
  0x34   : > { %1292 = vmatprep.subr.bf16.mxu1 %v1414_v1 }
  0x35   : > { %1273 = vmatpush3.bf16.msra.mxu0 %v1376_v33 }
  0x36   : > { %1274 = vmatprep.subr.bf16.mxu0 %v1414_v1 }
  0x37   : > { %1293 = vmatpush3.bf16.msra.mxu1 %v1386_v46 }
  0x38   : > { %1294 = vmatprep.subr.bf16.mxu1 %v1414_v1 }
  0x39   : > { %1275 = vmatpush3.bf16.msra.mxu0 %v1377_v34 }
  0x3a   : > { %1276 = vmatprep.subr.bf16.mxu0 %v1414_v1 }
  0x3b   : > { %1295 = vmatpush3.bf16.msra.mxu1 %v1388_v47 }
  0x3c   : > { %1296 = vmatprep.subr.bf16.mxu1 %v1414_v1 }
  0x3d   : > { %1277 = vmatpush3.bf16.msra.mxu0 %v1378_v35 }
  0x3e   : > { %1278 = vmatprep.subr.bf16.mxu0 %v1414_v1 }
  0x3f   : > { %1297 = vmatpush3.bf16.msra.mxu1 %v1390_v48 }
  0x40   : > { %1298 = vmatprep.subr.bf16.mxu1 %v1414_v1 }
  0x41   : > { %1279 = vmatpush3.bf16.msra.mxu0 %v1379_v36 }
  0x42   : > { %1280 = vmatprep.subr.bf16.mxu0 %v1414_v1 }
  0x43   : > { %1299 = vmatpush3.bf16.msra.mxu1 %v1392_v50 }
  0x44   : > { %1300 = vmatprep.subr.bf16.mxu1 %v1414_v1 }
  0x45   : > { %1281 = vmatpush3.bf16.msra.mxu0 %v1380_v37 }
  0x46   : > { %1282 = vmatprep.subr.bf16.mxu0 %v1414_v1 }
  0x47   : > { %1301 = vmatpush3.bf16.msra.mxu1 %v1394_v52 }
  0x48   : > { %1302 = vmatprep.subr.bf16.mxu1 %v1414_v1 }
  0x49   : > { %1283 = vmatpush3.bf16.msra.mxu0 %v1381_v38 }
  0x4a   : > { %1308 = vmatprep.subr.bf16.mxu0 %v1414_v1 }
  0x4b   : > { %1303 = vmatpush3.bf16.msra.mxu1 %v1396_v54 }
  0x4c   : > { %1285 = vmatmul.mubr.bf16.vlgmr.msra.gmra.mxu0 %v527_v41  ;;  %1328 = vmatprep.subr.bf16.mxu1 %v1414_v1 }
  0x4d   : > { %1324 = vmatprep.mubr.msk.bf16.mxu0 %vm1415_vm0, %v1414_v1  ;;  %1309 = vmatpush3.bf16.msra.mxu0 %v1383_v43 }
  0x4e   : > { %1310 = vmatprep.subr.bf16.mxu0 %v1414_v1 }
  0x51   : > { %1311 = vmatpush3.bf16.msra.mxu0 %v1385_v45 }
  0x52   : > { %1312 = vmatprep.subr.bf16.mxu0 %v1414_v1 }
  0x55   : > { %1313 = vmatpush3.bf16.msra.mxu0 %v1387_v49 }
  0x56   : > { %1314 = vmatprep.subr.bf16.mxu0 %v1414_v1 }
  0x59   : > { %1315 = vmatpush3.bf16.msra.mxu0 %v1389_v51 }
  0x5a   : > { %1316 = vmatprep.subr.bf16.mxu0 %v1414_v1 }
  0x5d   : > { %1317 = vmatpush3.bf16.msra.mxu0 %v1391_v53 }
  0x5e   : > { %1318 = vmatprep.subr.bf16.mxu0 %v1414_v1 }
  0x61   : > { %1319 = vmatpush3.bf16.msra.mxu0 %v1393_v55 }
  0x62   : > { %1320 = vmatprep.subr.bf16.mxu0 %v1414_v1 }
  0x65   : > { %1321 = vmatpush3.bf16.msra.mxu0 %v1395_v56 }
  0x66   : > { %1322 = vmatprep.subr.bf16.mxu0 %v1414_v1 }
  0x69   : > { %1323 = vmatpush3.bf16.msra.mxu0 %v1397_v57 }
  0xec   : > { %v429_v58 = vpop.f32.mrf.mxu0 }
  0xed   : > { %v518_v59 = vpop.f32.mrf.mxu1 }
  0xee   : > { %v1246_v60 = vpop.f32.mrf.mxu0  ;;  %v519_v3 = vadd.f32 %v518_v59, %v429_v58 }
  0xef   : > { %v1266_v61 = vpop.f32.mrf.mxu1 }
  0xf0   : > { %v432_v62 = vpop.f32.mrf.mxu0 }
  0xf1   : > { %v521_v63 = vpop.f32.mrf.mxu1 }
  0xf2   : > { %v1247_v0 = vpop.f32.mrf.mxu0  ;;  %v522_v9 = vadd.f32 %v521_v63, %v432_v62 }
  0xf3   : > { %v1267_v2 = vpop.f32.mrf.mxu1 }
 0x10c   : > { %v627_v4 = vpop.f32.mrf.mxu0 }
 0x10d   : > { %v634_v6 = vadd.f32 %v627_v4, %v519_v3 }
 0x10e   : > { %v1286_v8 = vpop.f32.mrf.mxu0 }
 0x10f   : > { %v643_v10 = vmul.f32 %v1112_v5, %v634_v6 }
 0x110   : > { %v630_v13 = vpop.f32.mrf.mxu0 }
 0x111   : > { %v652_v14 = vadd.f32 %v1113_v7, %v643_v10  ;;  %v635_v15 = vadd.f32 %v630_v13, %v522_v9 }
 0x112   : > { %v1287_v16 = vpop.f32.mrf.mxu0 }
 0x113   : > { %v654_v17 = vmax.f32 %v652_v14, 0.0  ;;  %v644_v18 = vmul.f32 %v1112_v5, %v635_v15 }
 0x115   : > { %656 = vst [vmem:[#allocation3 + $0x1] sm:$0xff] %v654_v17  ;;  %v653_v19 = vadd.f32 %v1113_v7, %v644_v18 }
 0x117   : > { %v655_v20 = vmax.f32 %v653_v19, 0.0 }
 0x119   : > { %657 = vst [vmem:[#allocation3 + $0x9] sm:$0xff] %v655_v20  ;;  %v679_v22 = vpack.c.bf16 %v655_v20, %v654_v17 }
 0x11b   : > { %1305 = vmatmul.mubr.bf16.vlgmr.msra.gmra.mxu1 %v679_v22 }
 0x11c   : > { %1329 = vmatpush3.bf16.msra.mxu1 %v1398_v21  ;;  %1344 = vmatprep.mubr.msk.bf16.mxu1 %vm1415_vm0, %v1414_v1  ;;  %v658_v24 = vld [vmem:[#allocation3] sm:$0xff] }
 0x11d   : > { %1330 = vmatprep.subr.bf16.mxu1 %v1414_v1 }
 0x120   : > { %v659_v25 = vld [vmem:[#allocation3 + $0x8] sm:$0xff]  ;;  %1331 = vmatpush3.bf16.msra.mxu1 %v1399_v23 }
 0x121   : > { %v660_v27 = vpack.c.bf16 %v659_v25, %v658_v24  ;;  %1332 = vmatprep.subr.bf16.mxu1 %v1414_v1  ;;  %v875_v33 = vld [vmem:[#allocation3 + $0x2] sm:$0xff]  ;;  %v876_v34 = vld [vmem:[#allocation3 + $0xa] sm:$0xff] }
 0x122   : > { %v877_v35 = vpack.c.bf16 %v876_v34, %v875_v33 }
 0x123   : > { %1325 = vmatmul.mubr.bf16.vlgmr.msra.gmra.mxu0 %v660_v27 }
 0x124   : > { %1333 = vmatpush3.bf16.msra.mxu1 %v1400_v26 }
 0x125   : > { %1334 = vmatprep.subr.bf16.mxu1 %v1414_v1 }
 0x128   : > { %1335 = vmatpush3.bf16.msra.mxu1 %v1401_v28 }
 0x129   : > { %1336 = vmatprep.subr.bf16.mxu1 %v1414_v1 }
 0x12c   : > { %1337 = vmatpush3.bf16.msra.mxu1 %v1402_v29 }
 0x12d   : > { %1338 = vmatprep.subr.bf16.mxu1 %v1414_v1 }
 0x130   : > { %1339 = vmatpush3.bf16.msra.mxu1 %v1403_v30 }
 0x131   : > { %1340 = vmatprep.subr.bf16.mxu1 %v1414_v1 }
 0x134   : > { %1341 = vmatpush3.bf16.msra.mxu1 %v1404_v31 }
 0x135   : > { %1342 = vmatprep.subr.bf16.mxu1 %v1414_v1 }
 0x138   : > { %1343 = vmatpush3.bf16.msra.mxu1 %v1405_v32 }
 0x13b   : > { %1345 = vmatmul.mubr.bf16.vlgmr.msra.gmra.mxu1 %v877_v35 }
 0x1db   : > { %v779_v36 = vpop.f32.mrf.mxu1 }
 0x1dd   : > { %v1306_v37 = vpop.f32.mrf.mxu1 }
 0x1df   : > { %v782_v38 = vpop.f32.mrf.mxu1 }
 0x1e1   : > { %v1307_v39 = vpop.f32.mrf.mxu1 }
 0x1e3   : > { %v868_v40 = vpop.f32.mrf.mxu0 }
 0x1e4   : > { %v869_v44 = vadd.f32 %v868_v40, %v779_v36 }
 0x1e5   : > { %v1326_v41 = vpop.f32.mrf.mxu0 }
 0x1e7   : > { %v871_v42 = vpop.f32.mrf.mxu0 }
 0x1e8   : > { %v872_v47 = vadd.f32 %v871_v42, %v782_v38 }
 0x1e9   : > { %v1327_v43 = vpop.f32.mrf.mxu0 }
 0x1fb   : > { %v977_v45 = vpop.f32.mrf.mxu1 }
 0x1fc   : > { %v984_v46 = vadd.f32 %v977_v45, %v869_v44 }
 0x1fd   : > { %v1346_v1 = vpop.f32.mrf.mxu1 }
 0x1fe   : > { %v986_v48 = vadd.f32 %v984_v46, %v1520_v11 }
 0x1ff   : > { %v980_v49 = vpop.f32.mrf.mxu1 }
 0x200   : > { %988 = vst [vmem:[%s278_s12] sm:$0xff] %v986_v48  ;;  %v985_v50 = vadd.f32 %v980_v49, %v872_v47 }
 0x201   : > { %v1347_v51 = vpop.f32.mrf.mxu1 }
 0x202   : > { %v987_v52 = vadd.f32 %v985_v50, %v1522_v12 }
 0x204   : > { %989 = vst [vmem:[%s278_s12 + $0x8] sm:$0xff] %v987_v52 }
 0x205 PF: > { %s17_s24 = sadd.s32 1, %s1412_s24  }
 0x206   : > { %p14_p4 = scmp.ge.s32.totalorder %s17_s24, 4  }
 0x208   :  { %16 = sbr.rel (!%p14_p4) target bundleno = 1 (0x1), region = 82 }

</bundles_post_ra>
